<compile_context>
chip_gen: v6e
topology: v6e:2x2x1
jax: 0.10.0
libtpu: 0.0.40
codegen_flags: <defaults>
</compile_context>

<pallas_src>
import jax
import jax.numpy as jnp
import numpy as np
from jax import lax
from jax.experimental import pallas as pl
from jax.experimental.pallas import tpu as pltpu

LANE = 128


def _round_up(x, m):
    return ((x + m - 1) // m) * m


# ---------------------------------------------------------------------------
# Fused decoder kernel: embedding DMA-gather -> L x LSTM cell -> linear.
# ---------------------------------------------------------------------------
def _make_decoder_kernel(num_layers):
    L = num_layers

    def kernel(*refs):
        ids_ref = refs[0]                        # SMEM (B,) int32 token ids
        emb_hbm = refs[1]                        # HBM  (V, E_pad) f32 table
        layer_refs = refs[2:2 + 3 * L]           # per layer: Wx bf16, Wh bf16, b f32
        wfc_ref, bfc_ref, h_in_ref, c_in_ref = refs[2 + 3 * L:6 + 3 * L]
        preds_ref, h_out_ref, c_out_ref = refs[6 + 3 * L:9 + 3 * L]
        x_buf, sem = refs[9 + 3 * L:]            # VMEM (B, E_pad) f32, DMA sems (B,)

        B = h_in_ref.shape[1]
        H = h_in_ref.shape[2]

        # ---- Embedding lookup: DMA-gather only the B needed rows from HBM ----
        # (ids are assumed in [0, V); an out-of-range id would be caught by the
        #  default DMA bounds check.)
        copies = []
        for b in range(B):                       # B small: static unroll, all
            cp = pltpu.make_async_copy(          # row DMAs in flight at once.
                emb_hbm.at[pl.ds(ids_ref[b], 1), :],
                x_buf.at[pl.ds(b, 1), :],
                sem.at[b])
            cp.start()
            copies.append(cp)
        for cp in copies:
            cp.wait()

        # TODO(synk): Dropout(p) identity (inference); see module header.
        layer_in = x_buf[...].astype(jnp.bfloat16)        # (B, E_pad)

        for l in range(L):                                # static layer loop
            w_x = layer_refs[3 * l][...]                  # (K_l, G_pad) bf16
            w_h = layer_refs[3 * l + 1][...]              # (H,   G_pad) bf16
            bias = layer_refs[3 * l + 2][...]             # (1,   G_pad) f32
            h = h_in_ref[l]                               # (B, H) f32
            c = c_in_ref[l]                               # (B, H) f32
            # Two accumulated MXU matmuls (no [x|h] concat), f32 accumulation.
            gates = (jnp.dot(layer_in, w_x, preferred_element_type=jnp.float32)
                     + jnp.dot(h.astype(jnp.bfloat16), w_h,
                               preferred_element_type=jnp.float32)
                     + bias)                              # (B, G_pad) f32
            # Contiguous PyTorch gate order i, f, g, o; columns beyond 4*H are
            # padding and never read.  For H % 128 == 0 these slices are
            # whole-vreg aligned; at small H they are intra-vreg (cheap at
            # this size, and weight bytes stay 4x smaller than per-gate pads).
            i_g = jax.nn.sigmoid(gates[:, 0 * H:1 * H])
            f_g = jax.nn.sigmoid(gates[:, 1 * H:2 * H])
            g_g = jnp.tanh(gates[:, 2 * H:3 * H])
            o_g = jax.nn.sigmoid(gates[:, 3 * H:4 * H])
            c_new = f_g * c + i_g * g_g
            h_new = o_g * jnp.tanh(c_new)
            h_out_ref[l] = h_new
            c_out_ref[l] = c_new
            layer_in = h_new.astype(jnp.bfloat16)

        # ---- Final Linear (lane-dense (B, O_pad) store) ----
        preds_ref[...] = (jnp.dot(layer_in, wfc_ref[...],
                                  preferred_element_type=jnp.float32)
                          + bfc_ref[...])

    return kernel


def _fused_decoder_call(params, ids, hidden, cell):
    L, B, H = hidden.shape
    E_pad = params["embedding"].shape[1]
    O_pad = params["b_fc"].shape[1]

    vmem = pl.BlockSpec(memory_space=pltpu.MemorySpace.VMEM)
    smem = pl.BlockSpec(memory_space=pltpu.MemorySpace.SMEM)
    hbm = pl.BlockSpec(memory_space=pl.ANY)       # embedding table stays in HBM

    flat_layers = []
    for (w_x, w_h, b) in params["layers"]:
        flat_layers += [w_x, w_h, b]
    n_lw = len(flat_layers)                       # == 3 * L

    args = ([ids.astype(jnp.int32), params["embedding"]] + flat_layers
            + [params["w_fc_t"], params["b_fc"], hidden, cell])
    in_specs = [smem, hbm] + [vmem] * (n_lw + 4)

    # VMEM budget from the actual footprint (+ headroom); embedding excluded
    # (HBM-resident, only B rows gathered per step).
    def _nb(a):
        return int(np.prod(a.shape)) * a.dtype.itemsize
    vmem_bytes = sum(_nb(a) for a in args[2:])                 # weights + state
    vmem_bytes += B * O_pad * 4 + 2 * _nb(hidden)              # outputs
    vmem_bytes += B * E_pad * 4                                # x_buf scratch
    vmem_limit = int(min(64 << 20, max(32 << 20, 2 * vmem_bytes + (4 << 20))))

    return pl.pallas_call(
        _make_decoder_kernel(L),
        out_shape=(jax.ShapeDtypeStruct((B, O_pad), jnp.float32),
                   jax.ShapeDtypeStruct((L, B, H), jnp.float32),
                   jax.ShapeDtypeStruct((L, B, H), jnp.float32)),
        in_specs=in_specs,
        out_specs=(vmem, vmem, vmem),
        scratch_shapes=[pltpu.VMEM((B, E_pad), jnp.float32),
                        pltpu.SemaphoreType.DMA((B,))],
        # Write new hidden/cell state back in place (P8).
        input_output_aliases={n_lw + 4: 1, n_lw + 5: 2},
        compiler_params=pltpu.CompilerParams(vmem_limit_bytes=vmem_limit),
    )(*args)


def make_decoder_step(out_size):
    """Returns a jitted single-step decoder:
    (params, x (B,), hidden (L,B,H), cell (L,B,H)) ->
    (preds (B, out), hidden (L,B,H), cell (L,B,H))."""

    @jax.jit
    def step(params, x, hidden, cell):
        # State is carried in its natural (L, B, H) layout: no per-step
        # pad/slice copies, so the aliased state buffers are reused step to
        # step.
        preds_p, h_new, c_new = _fused_decoder_call(
            params, x, hidden.astype(jnp.float32), cell.astype(jnp.float32))
        return preds_p[:, :out_size], h_new, c_new

    return step


# ---------------------------------------------------------------------------
# Parameters: raw (PyTorch layout) init + host-side packing into the kernel
# layout (bf16 weights, contiguous gates, true K dims).
# ---------------------------------------------------------------------------
def init_raw_params(key, vocab, emb_size, hidden_size, out_size, num_layers):
    scale = 1.0 / np.sqrt(hidden_size)
    keys = jax.random.split(key, num_layers + 2)
    raw = {
        "embedding": 0.1 * jax.random.normal(keys[0], (vocab, emb_size),
                                             jnp.float32),
        "w_ih": [], "w_hh": [], "b_ih": [], "b_hh": [],
    }
    for l in range(num_layers):
        in_dim = emb_size if l == 0 else hidden_size
        k1, k2, k3, k4 = jax.random.split(keys[1 + l], 4)
        raw["w_ih"].append(jax.random.uniform(
            k1, (4 * hidden_size, in_dim), jnp.float32, -scale, scale))
        raw["w_hh"].append(jax.random.uniform(
            k2, (4 * hidden_size, hidden_size), jnp.float32, -scale, scale))
        raw["b_ih"].append(jax.random.uniform(
            k3, (4 * hidden_size,), jnp.float32, -scale, scale))
        raw["b_hh"].append(jax.random.uniform(
            k4, (4 * hidden_size,), jnp.float32, -scale, scale))
    kf1, kf2 = jax.random.split(keys[-1], 2)
    raw["w_fc"] = jax.random.uniform(kf1, (out_size, hidden_size), jnp.float32,
                                     -scale, scale)
    raw["b_fc"] = jax.random.uniform(kf2, (out_size,), jnp.float32,
                                     -scale, scale)
    return raw


def pack_params(raw):
    emb = raw["embedding"]
    V, E = emb.shape
    H = raw["w_hh"][0].shape[1]
    O = raw["w_fc"].shape[0]
    L = len(raw["w_ih"])
    E_pad = _round_up(E, LANE)
    G_pad = _round_up(4 * H, LANE)      # contiguous gates, padded once
    O_pad = _round_up(O, LANE)

    # Embedding: bf16-rounded values, stored f32 + lane-padded for clean row
    # DMAs.  Table lives in HBM; only B rows are gathered per decode step.
    emb_q = emb.astype(jnp.bfloat16).astype(jnp.float32)
    emb_pad = jnp.zeros((V, E_pad), jnp.float32).at[:, :E].set(emb_q)

    layers = []
    for l in range(L):
        w_ih, w_hh = raw["w_ih"][l], raw["w_hh"][l]
        in_dim = w_ih.shape[1]
        k_x = E_pad if l == 0 else H                  # true K dims (no dead rows
        w_x = jnp.zeros((k_x, G_pad), jnp.float32)    # except the E->E_pad pad)
        w_x = w_x.at[:in_dim, :4 * H].set(w_ih.T)
        w_h = jnp.zeros((H, G_pad), jnp.float32).at[:, :4 * H].set(w_hh.T)
        b = jnp.zeros((1, G_pad), jnp.float32).at[0, :4 * H].set(
            raw["b_ih"][l] + raw["b_hh"][l])
        layers.append((w_x.astype(jnp.bfloat16),
                       w_h.astype(jnp.bfloat16),
                       b))

    w_fc_t = jnp.zeros((H, O_pad), jnp.float32).at[:, :O].set(raw["w_fc"].T)
    b_fc = jnp.zeros((1, O_pad), jnp.float32).at[0, :O].set(raw["b_fc"])

    return {
        "embedding": emb_pad,                     # (V, E_pad) f32, HBM-gathered
        "layers": layers,                         # L x (Wx bf16, Wh bf16, b f32)
        "w_fc_t": w_fc_t.astype(jnp.bfloat16),    # (H, O_pad) bf16
        "b_fc": b_fc,                             # (1, O_pad) f32
    }


def quantize_raw(raw):
    """bf16-round the weights the kernel stores in bf16 (reference parity)."""
    q = lambda a: a.astype(jnp.bfloat16).astype(jnp.float32)
    out = dict(raw)
    out["embedding"] = q(raw["embedding"])
    out["w_ih"] = [q(w) for w in raw["w_ih"]]
    out["w_hh"] = [q(w) for w in raw["w_hh"]]
    out["w_fc"] = q(raw["w_fc"])
    return out


# ---------------------------------------------------------------------------
# Pure-JAX reference on the RAW (PyTorch-layout) params for a sanity check.
# ---------------------------------------------------------------------------
def reference_forward(raw, x, hidden, cell):
    emb = raw["embedding"][x]
    H = hidden.shape[-1]
    layer_in = emb
    new_h, new_c = [], []
    for l in range(hidden.shape[0]):
        gates = (layer_in @ raw["w_ih"][l].T + hidden[l] @ raw["w_hh"][l].T
                 + raw["b_ih"][l] + raw["b_hh"][l])
        i_g = jax.nn.sigmoid(gates[:, :H])
        f_g = jax.nn.sigmoid(gates[:, H:2 * H])
        g_g = jnp.tanh(gates[:, 2 * H:3 * H])
        o_g = jax.nn.sigmoid(gates[:, 3 * H:])
        c_l = f_g * cell[l] + i_g * g_g
        h_l = o_g * jnp.tanh(c_l)
        new_h.append(h_l)
        new_c.append(c_l)
        layer_in = h_l
    preds = layer_in @ raw["w_fc"].T + raw["b_fc"]
    return preds, jnp.stack(new_h, 0), jnp.stack(new_c, 0)


if __name__ == "__main__":
    # Small shapes consistent with the module's forward.
    VOCAB, EMB, HID, OUT, LAYERS, P = 50, 16, 32, 40, 2, 0.1
    BATCH = 8

    root = jax.random.PRNGKey(0)
    k_param, k_x, k_h, k_c = jax.random.split(root, 4)

    raw = init_raw_params(k_param, VOCAB, EMB, HID, OUT, LAYERS)
    packed = pack_params(raw)

    x = jax.random.randint(k_x, (BATCH,), 0, VOCAB, dtype=jnp.int32)
    hidden = jax.random.normal(k_h, (LAYERS, BATCH, HID), jnp.float32)
    cell = jax.random.normal(k_c, (LAYERS, BATCH, HID), jnp.float32)

    step = make_decoder_step(OUT)
    preds, new_h, new_c = step(packed, x, hidden, cell)
    jax.block_until_ready((preds, new_h, new_c))

    # Reference uses the same bf16-rounded weight values (f32 everywhere else);
    # remaining deltas are bf16 activation rounding in the MXU path.
    ref_p, ref_h, ref_c = reference_forward(quantize_raw(raw), x, hidden, cell)
    np.testing.assert_allclose(np.asarray(preds), np.asarray(ref_p),
                               rtol=3e-2, atol=3e-2)
    np.testing.assert_allclose(np.asarray(new_h), np.asarray(ref_h),
                               rtol=3e-2, atol=3e-2)
    np.testing.assert_allclose(np.asarray(new_c), np.asarray(ref_c),
                               rtol=3e-2, atol=3e-2)

    assert preds.shape == (BATCH, OUT)
    assert new_h.shape == (LAYERS, BATCH, HID)
    assert new_c.shape == (LAYERS, BATCH, HID)

    print("KERNEL_OK")
</pallas_src>

<mosaic_0001>
module attributes {stable_mosaic.version = 11 : i64} {
  func.func @kernel(%arg0: memref<8xi32, #tpu.memory_space<smem>>, %arg1: memref<50x128xf32, #tpu.memory_space<any>>, %arg2: memref<128x128xbf16, #tpu.memory_space<vmem>>, %arg3: memref<32x128xbf16, #tpu.memory_space<vmem>>, %arg4: memref<1x128xf32, #tpu.memory_space<vmem>>, %arg5: memref<32x128xbf16, #tpu.memory_space<vmem>>, %arg6: memref<32x128xbf16, #tpu.memory_space<vmem>>, %arg7: memref<1x128xf32, #tpu.memory_space<vmem>>, %arg8: memref<32x128xbf16, #tpu.memory_space<vmem>>, %arg9: memref<1x128xf32, #tpu.memory_space<vmem>>, %arg10: memref<2x8x32xf32, #tpu.memory_space<vmem>>, %arg11: memref<2x8x32xf32, #tpu.memory_space<vmem>>, %arg12: memref<8x128xf32, #tpu.memory_space<vmem>>, %arg13: memref<2x8x32xf32, #tpu.memory_space<vmem>>, %arg14: memref<2x8x32xf32, #tpu.memory_space<vmem>>, %arg15: memref<8x128xf32, #tpu.memory_space<vmem>>, %arg16: memref<8x!tpu.dma_semaphore, #tpu.memory_space<semaphore_mem>>) attributes {dimension_semantics = [], scalar_prefetch = 0 : i64, scratch_operands = 2 : i64, tpu.core_type = #tpu.core_type<tc>} {
    %c0 = arith.constant 0 : index
    %0 = memref.load %arg0[%c0] : memref<8xi32, #tpu.memory_space<smem>>
    %c0_i32 = arith.constant 0 : i32
    %c0_i32_0 = arith.constant 0 : i32
    %1 = tpu.memref_slice %arg1[%0, %c0_i32_0] : memref<50x128xf32, #tpu.memory_space<any>> -> memref<1x128xf32, #tpu.memory_space<any>>
    %c0_i32_1 = arith.constant 0 : i32
    %c0_i32_2 = arith.constant 0 : i32
    %2 = tpu.memref_slice %arg15[%c0_i32_1, %c0_i32_2] : memref<8x128xf32, #tpu.memory_space<vmem>> -> memref<1x128xf32, #tpu.memory_space<vmem>>
    %3 = tpu.memref_slice %arg16[%c0_i32] : memref<8x!tpu.dma_semaphore, #tpu.memory_space<semaphore_mem>> -> memref<1x!tpu.dma_semaphore, #tpu.memory_space<semaphore_mem>>
    %4 = tpu.memref_squeeze %3 : memref<1x!tpu.dma_semaphore, #tpu.memory_space<semaphore_mem>> -> memref<!tpu.dma_semaphore, #tpu.memory_space<semaphore_mem>>
    tpu.enqueue_dma source(%1 : memref<1x128xf32, #tpu.memory_space<any>>) target(%2 : memref<1x128xf32, #tpu.memory_space<vmem>>) target_semaphore(%4 : memref<!tpu.dma_semaphore, #tpu.memory_space<semaphore_mem>>)
    %c1 = arith.constant 1 : index
    %5 = memref.load %arg0[%c1] : memref<8xi32, #tpu.memory_space<smem>>
    %c1_i32 = arith.constant 1 : i32
    %c0_i32_3 = arith.constant 0 : i32
    %6 = tpu.memref_slice %arg1[%5, %c0_i32_3] : memref<50x128xf32, #tpu.memory_space<any>> -> memref<1x128xf32, #tpu.memory_space<any>>
    %c1_i32_4 = arith.constant 1 : i32
    %c0_i32_5 = arith.constant 0 : i32
    %7 = tpu.memref_slice %arg15[%c1_i32_4, %c0_i32_5] : memref<8x128xf32, #tpu.memory_space<vmem>> -> memref<1x128xf32, #tpu.memory_space<vmem>>
    %8 = tpu.memref_slice %arg16[%c1_i32] : memref<8x!tpu.dma_semaphore, #tpu.memory_space<semaphore_mem>> -> memref<1x!tpu.dma_semaphore, #tpu.memory_space<semaphore_mem>>
    %9 = tpu.memref_squeeze %8 : memref<1x!tpu.dma_semaphore, #tpu.memory_space<semaphore_mem>> -> memref<!tpu.dma_semaphore, #tpu.memory_space<semaphore_mem>>
    tpu.enqueue_dma source(%6 : memref<1x128xf32, #tpu.memory_space<any>>) target(%7 : memref<1x128xf32, #tpu.memory_space<vmem>>) target_semaphore(%9 : memref<!tpu.dma_semaphore, #tpu.memory_space<semaphore_mem>>)
    %c2 = arith.constant 2 : index
    %10 = memref.load %arg0[%c2] : memref<8xi32, #tpu.memory_space<smem>>
    %c2_i32 = arith.constant 2 : i32
    %c0_i32_6 = arith.constant 0 : i32
    %11 = tpu.memref_slice %arg1[%10, %c0_i32_6] : memref<50x128xf32, #tpu.memory_space<any>> -> memref<1x128xf32, #tpu.memory_space<any>>
    %c2_i32_7 = arith.constant 2 : i32
    %c0_i32_8 = arith.constant 0 : i32
    %12 = tpu.memref_slice %arg15[%c2_i32_7, %c0_i32_8] : memref<8x128xf32, #tpu.memory_space<vmem>> -> memref<1x128xf32, #tpu.memory_space<vmem>>
    %13 = tpu.memref_slice %arg16[%c2_i32] : memref<8x!tpu.dma_semaphore, #tpu.memory_space<semaphore_mem>> -> memref<1x!tpu.dma_semaphore, #tpu.memory_space<semaphore_mem>>
    %14 = tpu.memref_squeeze %13 : memref<1x!tpu.dma_semaphore, #tpu.memory_space<semaphore_mem>> -> memref<!tpu.dma_semaphore, #tpu.memory_space<semaphore_mem>>
    tpu.enqueue_dma source(%11 : memref<1x128xf32, #tpu.memory_space<any>>) target(%12 : memref<1x128xf32, #tpu.memory_space<vmem>>) target_semaphore(%14 : memref<!tpu.dma_semaphore, #tpu.memory_space<semaphore_mem>>)
    %c3 = arith.constant 3 : index
    %15 = memref.load %arg0[%c3] : memref<8xi32, #tpu.memory_space<smem>>
    %c3_i32 = arith.constant 3 : i32
    %c0_i32_9 = arith.constant 0 : i32
    %16 = tpu.memref_slice %arg1[%15, %c0_i32_9] : memref<50x128xf32, #tpu.memory_space<any>> -> memref<1x128xf32, #tpu.memory_space<any>>
    %c3_i32_10 = arith.constant 3 : i32
    %c0_i32_11 = arith.constant 0 : i32
    %17 = tpu.memref_slice %arg15[%c3_i32_10, %c0_i32_11] : memref<8x128xf32, #tpu.memory_space<vmem>> -> memref<1x128xf32, #tpu.memory_space<vmem>>
    %18 = tpu.memref_slice %arg16[%c3_i32] : memref<8x!tpu.dma_semaphore, #tpu.memory_space<semaphore_mem>> -> memref<1x!tpu.dma_semaphore, #tpu.memory_space<semaphore_mem>>
    %19 = tpu.memref_squeeze %18 : memref<1x!tpu.dma_semaphore, #tpu.memory_space<semaphore_mem>> -> memref<!tpu.dma_semaphore, #tpu.memory_space<semaphore_mem>>
    tpu.enqueue_dma source(%16 : memref<1x128xf32, #tpu.memory_space<any>>) target(%17 : memref<1x128xf32, #tpu.memory_space<vmem>>) target_semaphore(%19 : memref<!tpu.dma_semaphore, #tpu.memory_space<semaphore_mem>>)
    %c4 = arith.constant 4 : index
    %20 = memref.load %arg0[%c4] : memref<8xi32, #tpu.memory_space<smem>>
    %c4_i32 = arith.constant 4 : i32
    %c0_i32_12 = arith.constant 0 : i32
    %21 = tpu.memref_slice %arg1[%20, %c0_i32_12] : memref<50x128xf32, #tpu.memory_space<any>> -> memref<1x128xf32, #tpu.memory_space<any>>
    %c4_i32_13 = arith.constant 4 : i32
    %c0_i32_14 = arith.constant 0 : i32
    %22 = tpu.memref_slice %arg15[%c4_i32_13, %c0_i32_14] : memref<8x128xf32, #tpu.memory_space<vmem>> -> memref<1x128xf32, #tpu.memory_space<vmem>>
    %23 = tpu.memref_slice %arg16[%c4_i32] : memref<8x!tpu.dma_semaphore, #tpu.memory_space<semaphore_mem>> -> memref<1x!tpu.dma_semaphore, #tpu.memory_space<semaphore_mem>>
    %24 = tpu.memref_squeeze %23 : memref<1x!tpu.dma_semaphore, #tpu.memory_space<semaphore_mem>> -> memref<!tpu.dma_semaphore, #tpu.memory_space<semaphore_mem>>
    tpu.enqueue_dma source(%21 : memref<1x128xf32, #tpu.memory_space<any>>) target(%22 : memref<1x128xf32, #tpu.memory_space<vmem>>) target_semaphore(%24 : memref<!tpu.dma_semaphore, #tpu.memory_space<semaphore_mem>>)
    %c5 = arith.constant 5 : index
    %25 = memref.load %arg0[%c5] : memref<8xi32, #tpu.memory_space<smem>>
    %c5_i32 = arith.constant 5 : i32
    %c0_i32_15 = arith.constant 0 : i32
    %26 = tpu.memref_slice %arg1[%25, %c0_i32_15] : memref<50x128xf32, #tpu.memory_space<any>> -> memref<1x128xf32, #tpu.memory_space<any>>
    %c5_i32_16 = arith.constant 5 : i32
    %c0_i32_17 = arith.constant 0 : i32
    %27 = tpu.memref_slice %arg15[%c5_i32_16, %c0_i32_17] : memref<8x128xf32, #tpu.memory_space<vmem>> -> memref<1x128xf32, #tpu.memory_space<vmem>>
    %28 = tpu.memref_slice %arg16[%c5_i32] : memref<8x!tpu.dma_semaphore, #tpu.memory_space<semaphore_mem>> -> memref<1x!tpu.dma_semaphore, #tpu.memory_space<semaphore_mem>>
    %29 = tpu.memref_squeeze %28 : memref<1x!tpu.dma_semaphore, #tpu.memory_space<semaphore_mem>> -> memref<!tpu.dma_semaphore, #tpu.memory_space<semaphore_mem>>
    tpu.enqueue_dma source(%26 : memref<1x128xf32, #tpu.memory_space<any>>) target(%27 : memref<1x128xf32, #tpu.memory_space<vmem>>) target_semaphore(%29 : memref<!tpu.dma_semaphore, #tpu.memory_space<semaphore_mem>>)
    %c6 = arith.constant 6 : index
    %30 = memref.load %arg0[%c6] : memref<8xi32, #tpu.memory_space<smem>>
    %c6_i32 = arith.constant 6 : i32
    %c0_i32_18 = arith.constant 0 : i32
    %31 = tpu.memref_slice %arg1[%30, %c0_i32_18] : memref<50x128xf32, #tpu.memory_space<any>> -> memref<1x128xf32, #tpu.memory_space<any>>
    %c6_i32_19 = arith.constant 6 : i32
    %c0_i32_20 = arith.constant 0 : i32
    %32 = tpu.memref_slice %arg15[%c6_i32_19, %c0_i32_20] : memref<8x128xf32, #tpu.memory_space<vmem>> -> memref<1x128xf32, #tpu.memory_space<vmem>>
    %33 = tpu.memref_slice %arg16[%c6_i32] : memref<8x!tpu.dma_semaphore, #tpu.memory_space<semaphore_mem>> -> memref<1x!tpu.dma_semaphore, #tpu.memory_space<semaphore_mem>>
    %34 = tpu.memref_squeeze %33 : memref<1x!tpu.dma_semaphore, #tpu.memory_space<semaphore_mem>> -> memref<!tpu.dma_semaphore, #tpu.memory_space<semaphore_mem>>
    tpu.enqueue_dma source(%31 : memref<1x128xf32, #tpu.memory_space<any>>) target(%32 : memref<1x128xf32, #tpu.memory_space<vmem>>) target_semaphore(%34 : memref<!tpu.dma_semaphore, #tpu.memory_space<semaphore_mem>>)
    %c7 = arith.constant 7 : index
    %35 = memref.load %arg0[%c7] : memref<8xi32, #tpu.memory_space<smem>>
    %c7_i32 = arith.constant 7 : i32
    %c0_i32_21 = arith.constant 0 : i32
    %36 = tpu.memref_slice %arg1[%35, %c0_i32_21] : memref<50x128xf32, #tpu.memory_space<any>> -> memref<1x128xf32, #tpu.memory_space<any>>
    %c7_i32_22 = arith.constant 7 : i32
    %c0_i32_23 = arith.constant 0 : i32
    %37 = tpu.memref_slice %arg15[%c7_i32_22, %c0_i32_23] : memref<8x128xf32, #tpu.memory_space<vmem>> -> memref<1x128xf32, #tpu.memory_space<vmem>>
    %38 = tpu.memref_slice %arg16[%c7_i32] : memref<8x!tpu.dma_semaphore, #tpu.memory_space<semaphore_mem>> -> memref<1x!tpu.dma_semaphore, #tpu.memory_space<semaphore_mem>>
    %39 = tpu.memref_squeeze %38 : memref<1x!tpu.dma_semaphore, #tpu.memory_space<semaphore_mem>> -> memref<!tpu.dma_semaphore, #tpu.memory_space<semaphore_mem>>
    tpu.enqueue_dma source(%36 : memref<1x128xf32, #tpu.memory_space<any>>) target(%37 : memref<1x128xf32, #tpu.memory_space<vmem>>) target_semaphore(%39 : memref<!tpu.dma_semaphore, #tpu.memory_space<semaphore_mem>>)
    %c0_i32_24 = arith.constant 0 : i32
    %c0_i32_25 = arith.constant 0 : i32
    %40 = tpu.memref_slice %arg1[%0, %c0_i32_25] : memref<50x128xf32, #tpu.memory_space<any>> -> memref<1x128xf32, #tpu.memory_space<any>>
    %c0_i32_26 = arith.constant 0 : i32
    %c0_i32_27 = arith.constant 0 : i32
    %41 = tpu.memref_slice %arg15[%c0_i32_26, %c0_i32_27] : memref<8x128xf32, #tpu.memory_space<vmem>> -> memref<1x128xf32, #tpu.memory_space<vmem>>
    %42 = tpu.memref_slice %arg16[%c0_i32_24] : memref<8x!tpu.dma_semaphore, #tpu.memory_space<semaphore_mem>> -> memref<1x!tpu.dma_semaphore, #tpu.memory_space<semaphore_mem>>
    %43 = tpu.memref_squeeze %42 : memref<1x!tpu.dma_semaphore, #tpu.memory_space<semaphore_mem>> -> memref<!tpu.dma_semaphore, #tpu.memory_space<semaphore_mem>>
    tpu.wait_dma2 semaphore(%43 : memref<!tpu.dma_semaphore, #tpu.memory_space<semaphore_mem>>) src(%40 : memref<1x128xf32, #tpu.memory_space<any>>) dst(%41 : memref<1x128xf32, #tpu.memory_space<vmem>>)
    %c1_i32_28 = arith.constant 1 : i32
    %c0_i32_29 = arith.constant 0 : i32
    %44 = tpu.memref_slice %arg1[%5, %c0_i32_29] : memref<50x128xf32, #tpu.memory_space<any>> -> memref<1x128xf32, #tpu.memory_space<any>>
    %c1_i32_30 = arith.constant 1 : i32
    %c0_i32_31 = arith.constant 0 : i32
    %45 = tpu.memref_slice %arg15[%c1_i32_30, %c0_i32_31] : memref<8x128xf32, #tpu.memory_space<vmem>> -> memref<1x128xf32, #tpu.memory_space<vmem>>
    %46 = tpu.memref_slice %arg16[%c1_i32_28] : memref<8x!tpu.dma_semaphore, #tpu.memory_space<semaphore_mem>> -> memref<1x!tpu.dma_semaphore, #tpu.memory_space<semaphore_mem>>
    %47 = tpu.memref_squeeze %46 : memref<1x!tpu.dma_semaphore, #tpu.memory_space<semaphore_mem>> -> memref<!tpu.dma_semaphore, #tpu.memory_space<semaphore_mem>>
    tpu.wait_dma2 semaphore(%47 : memref<!tpu.dma_semaphore, #tpu.memory_space<semaphore_mem>>) src(%44 : memref<1x128xf32, #tpu.memory_space<any>>) dst(%45 : memref<1x128xf32, #tpu.memory_space<vmem>>)
    %c2_i32_32 = arith.constant 2 : i32
    %c0_i32_33 = arith.constant 0 : i32
    %48 = tpu.memref_slice %arg1[%10, %c0_i32_33] : memref<50x128xf32, #tpu.memory_space<any>> -> memref<1x128xf32, #tpu.memory_space<any>>
    %c2_i32_34 = arith.constant 2 : i32
    %c0_i32_35 = arith.constant 0 : i32
    %49 = tpu.memref_slice %arg15[%c2_i32_34, %c0_i32_35] : memref<8x128xf32, #tpu.memory_space<vmem>> -> memref<1x128xf32, #tpu.memory_space<vmem>>
    %50 = tpu.memref_slice %arg16[%c2_i32_32] : memref<8x!tpu.dma_semaphore, #tpu.memory_space<semaphore_mem>> -> memref<1x!tpu.dma_semaphore, #tpu.memory_space<semaphore_mem>>
    %51 = tpu.memref_squeeze %50 : memref<1x!tpu.dma_semaphore, #tpu.memory_space<semaphore_mem>> -> memref<!tpu.dma_semaphore, #tpu.memory_space<semaphore_mem>>
    tpu.wait_dma2 semaphore(%51 : memref<!tpu.dma_semaphore, #tpu.memory_space<semaphore_mem>>) src(%48 : memref<1x128xf32, #tpu.memory_space<any>>) dst(%49 : memref<1x128xf32, #tpu.memory_space<vmem>>)
    %c3_i32_36 = arith.constant 3 : i32
    %c0_i32_37 = arith.constant 0 : i32
    %52 = tpu.memref_slice %arg1[%15, %c0_i32_37] : memref<50x128xf32, #tpu.memory_space<any>> -> memref<1x128xf32, #tpu.memory_space<any>>
    %c3_i32_38 = arith.constant 3 : i32
    %c0_i32_39 = arith.constant 0 : i32
    %53 = tpu.memref_slice %arg15[%c3_i32_38, %c0_i32_39] : memref<8x128xf32, #tpu.memory_space<vmem>> -> memref<1x128xf32, #tpu.memory_space<vmem>>
    %54 = tpu.memref_slice %arg16[%c3_i32_36] : memref<8x!tpu.dma_semaphore, #tpu.memory_space<semaphore_mem>> -> memref<1x!tpu.dma_semaphore, #tpu.memory_space<semaphore_mem>>
    %55 = tpu.memref_squeeze %54 : memref<1x!tpu.dma_semaphore, #tpu.memory_space<semaphore_mem>> -> memref<!tpu.dma_semaphore, #tpu.memory_space<semaphore_mem>>
    tpu.wait_dma2 semaphore(%55 : memref<!tpu.dma_semaphore, #tpu.memory_space<semaphore_mem>>) src(%52 : memref<1x128xf32, #tpu.memory_space<any>>) dst(%53 : memref<1x128xf32, #tpu.memory_space<vmem>>)
    %c4_i32_40 = arith.constant 4 : i32
    %c0_i32_41 = arith.constant 0 : i32
    %56 = tpu.memref_slice %arg1[%20, %c0_i32_41] : memref<50x128xf32, #tpu.memory_space<any>> -> memref<1x128xf32, #tpu.memory_space<any>>
    %c4_i32_42 = arith.constant 4 : i32
    %c0_i32_43 = arith.constant 0 : i32
    %57 = tpu.memref_slice %arg15[%c4_i32_42, %c0_i32_43] : memref<8x128xf32, #tpu.memory_space<vmem>> -> memref<1x128xf32, #tpu.memory_space<vmem>>
    %58 = tpu.memref_slice %arg16[%c4_i32_40] : memref<8x!tpu.dma_semaphore, #tpu.memory_space<semaphore_mem>> -> memref<1x!tpu.dma_semaphore, #tpu.memory_space<semaphore_mem>>
    %59 = tpu.memref_squeeze %58 : memref<1x!tpu.dma_semaphore, #tpu.memory_space<semaphore_mem>> -> memref<!tpu.dma_semaphore, #tpu.memory_space<semaphore_mem>>
    tpu.wait_dma2 semaphore(%59 : memref<!tpu.dma_semaphore, #tpu.memory_space<semaphore_mem>>) src(%56 : memref<1x128xf32, #tpu.memory_space<any>>) dst(%57 : memref<1x128xf32, #tpu.memory_space<vmem>>)
    %c5_i32_44 = arith.constant 5 : i32
    %c0_i32_45 = arith.constant 0 : i32
    %60 = tpu.memref_slice %arg1[%25, %c0_i32_45] : memref<50x128xf32, #tpu.memory_space<any>> -> memref<1x128xf32, #tpu.memory_space<any>>
    %c5_i32_46 = arith.constant 5 : i32
    %c0_i32_47 = arith.constant 0 : i32
    %61 = tpu.memref_slice %arg15[%c5_i32_46, %c0_i32_47] : memref<8x128xf32, #tpu.memory_space<vmem>> -> memref<1x128xf32, #tpu.memory_space<vmem>>
    %62 = tpu.memref_slice %arg16[%c5_i32_44] : memref<8x!tpu.dma_semaphore, #tpu.memory_space<semaphore_mem>> -> memref<1x!tpu.dma_semaphore, #tpu.memory_space<semaphore_mem>>
    %63 = tpu.memref_squeeze %62 : memref<1x!tpu.dma_semaphore, #tpu.memory_space<semaphore_mem>> -> memref<!tpu.dma_semaphore, #tpu.memory_space<semaphore_mem>>
    tpu.wait_dma2 semaphore(%63 : memref<!tpu.dma_semaphore, #tpu.memory_space<semaphore_mem>>) src(%60 : memref<1x128xf32, #tpu.memory_space<any>>) dst(%61 : memref<1x128xf32, #tpu.memory_space<vmem>>)
    %c6_i32_48 = arith.constant 6 : i32
    %c0_i32_49 = arith.constant 0 : i32
    %64 = tpu.memref_slice %arg1[%30, %c0_i32_49] : memref<50x128xf32, #tpu.memory_space<any>> -> memref<1x128xf32, #tpu.memory_space<any>>
    %c6_i32_50 = arith.constant 6 : i32
    %c0_i32_51 = arith.constant 0 : i32
    %65 = tpu.memref_slice %arg15[%c6_i32_50, %c0_i32_51] : memref<8x128xf32, #tpu.memory_space<vmem>> -> memref<1x128xf32, #tpu.memory_space<vmem>>
    %66 = tpu.memref_slice %arg16[%c6_i32_48] : memref<8x!tpu.dma_semaphore, #tpu.memory_space<semaphore_mem>> -> memref<1x!tpu.dma_semaphore, #tpu.memory_space<semaphore_mem>>
    %67 = tpu.memref_squeeze %66 : memref<1x!tpu.dma_semaphore, #tpu.memory_space<semaphore_mem>> -> memref<!tpu.dma_semaphore, #tpu.memory_space<semaphore_mem>>
    tpu.wait_dma2 semaphore(%67 : memref<!tpu.dma_semaphore, #tpu.memory_space<semaphore_mem>>) src(%64 : memref<1x128xf32, #tpu.memory_space<any>>) dst(%65 : memref<1x128xf32, #tpu.memory_space<vmem>>)
    %c7_i32_52 = arith.constant 7 : i32
    %c0_i32_53 = arith.constant 0 : i32
    %68 = tpu.memref_slice %arg1[%35, %c0_i32_53] : memref<50x128xf32, #tpu.memory_space<any>> -> memref<1x128xf32, #tpu.memory_space<any>>
    %c7_i32_54 = arith.constant 7 : i32
    %c0_i32_55 = arith.constant 0 : i32
    %69 = tpu.memref_slice %arg15[%c7_i32_54, %c0_i32_55] : memref<8x128xf32, #tpu.memory_space<vmem>> -> memref<1x128xf32, #tpu.memory_space<vmem>>
    %70 = tpu.memref_slice %arg16[%c7_i32_52] : memref<8x!tpu.dma_semaphore, #tpu.memory_space<semaphore_mem>> -> memref<1x!tpu.dma_semaphore, #tpu.memory_space<semaphore_mem>>
    %71 = tpu.memref_squeeze %70 : memref<1x!tpu.dma_semaphore, #tpu.memory_space<semaphore_mem>> -> memref<!tpu.dma_semaphore, #tpu.memory_space<semaphore_mem>>
    tpu.wait_dma2 semaphore(%71 : memref<!tpu.dma_semaphore, #tpu.memory_space<semaphore_mem>>) src(%68 : memref<1x128xf32, #tpu.memory_space<any>>) dst(%69 : memref<1x128xf32, #tpu.memory_space<vmem>>)
    %c0_56 = arith.constant 0 : index
    %c0_57 = arith.constant 0 : index
    %72 = vector.load %arg15[%c0_56, %c0_57] : memref<8x128xf32, #tpu.memory_space<vmem>>, vector<8x128xf32>
    %73 = arith.truncf %72 : vector<8x128xf32> to vector<8x128xbf16>
    %c0_58 = arith.constant 0 : index
    %c0_59 = arith.constant 0 : index
    %74 = vector.load %arg2[%c0_58, %c0_59] : memref<128x128xbf16, #tpu.memory_space<vmem>>, vector<128x128xbf16>
    %c0_60 = arith.constant 0 : index
    %c0_61 = arith.constant 0 : index
    %75 = vector.load %arg3[%c0_60, %c0_61] : memref<32x128xbf16, #tpu.memory_space<vmem>>, vector<32x128xbf16>
    %c0_62 = arith.constant 0 : index
    %c0_63 = arith.constant 0 : index
    %76 = vector.load %arg4[%c0_62, %c0_63] : memref<1x128xf32, #tpu.memory_space<vmem>>, vector<1x128xf32>
    %c0_64 = arith.constant 0 : index
    %c0_65 = arith.constant 0 : index
    %c0_66 = arith.constant 0 : index
    %77 = vector.load %arg10[%c0_64, %c0_65, %c0_66] : memref<2x8x32xf32, #tpu.memory_space<vmem>>, vector<1x8x32xf32>
    %78 = vector.shape_cast %77 : vector<1x8x32xf32> to vector<8x32xf32>
    %c0_67 = arith.constant 0 : index
    %c0_68 = arith.constant 0 : index
    %c0_69 = arith.constant 0 : index
    %79 = vector.load %arg11[%c0_67, %c0_68, %c0_69] : memref<2x8x32xf32, #tpu.memory_space<vmem>>, vector<1x8x32xf32>
    %80 = vector.shape_cast %79 : vector<1x8x32xf32> to vector<8x32xf32>
    %cst = arith.constant dense<0.000000e+00> : vector<8x128xf32>
    %81 = tpu.matmul %73, %74, %cst {dimension_numbers = #tpu.dot_dimension_numbers<[1], [0], [0], [1], [0, 0, 1, 1], [], []>} : vector<8x128xbf16>, vector<128x128xbf16>, vector<8x128xf32> -> vector<8x128xf32>
    %82 = arith.truncf %78 : vector<8x32xf32> to vector<8x32xbf16>
    %cst_70 = arith.constant dense<0.000000e+00> : vector<8x128xf32>
    %83 = tpu.matmul %82, %75, %cst_70 {dimension_numbers = #tpu.dot_dimension_numbers<[1], [0], [0], [1], [0, 0, 1, 1], [], []>} : vector<8x32xbf16>, vector<32x128xbf16>, vector<8x128xf32> -> vector<8x128xf32>
    %84 = arith.addf %81, %83 : vector<8x128xf32>
    %85 = vector.broadcast %76 : vector<1x128xf32> to vector<8x128xf32>
    %86 = arith.addf %84, %85 : vector<8x128xf32>
    %87 = vector.extract_strided_slice %86 {offsets = [0, 0], sizes = [8, 32], strides = [1, 1]} : vector<8x128xf32> to vector<8x32xf32>
    %88 = arith.negf %87 : vector<8x32xf32>
    %89 = math.exp %88 : vector<8x32xf32>
    %cst_71 = arith.constant 1.000000e+00 : f32
    %90 = vector.broadcast %cst_71 : f32 to vector<8x32xf32>
    %91 = arith.addf %90, %89 : vector<8x32xf32>
    %92 = arith.divf %90, %91 : vector<8x32xf32>
    %93 = vector.extract_strided_slice %86 {offsets = [0, 32], sizes = [8, 32], strides = [1, 1]} : vector<8x128xf32> to vector<8x32xf32>
    %94 = arith.negf %93 : vector<8x32xf32>
    %95 = math.exp %94 : vector<8x32xf32>
    %cst_72 = arith.constant 1.000000e+00 : f32
    %96 = vector.broadcast %cst_72 : f32 to vector<8x32xf32>
    %97 = arith.addf %96, %95 : vector<8x32xf32>
    %98 = arith.divf %96, %97 : vector<8x32xf32>
    %99 = vector.extract_strided_slice %86 {offsets = [0, 64], sizes = [8, 32], strides = [1, 1]} : vector<8x128xf32> to vector<8x32xf32>
    %100 = math.tanh %99 : vector<8x32xf32>
    %101 = vector.extract_strided_slice %86 {offsets = [0, 96], sizes = [8, 32], strides = [1, 1]} : vector<8x128xf32> to vector<8x32xf32>
    %102 = arith.negf %101 : vector<8x32xf32>
    %103 = math.exp %102 : vector<8x32xf32>
    %cst_73 = arith.constant 1.000000e+00 : f32
    %104 = vector.broadcast %cst_73 : f32 to vector<8x32xf32>
    %105 = arith.addf %104, %103 : vector<8x32xf32>
    %106 = arith.divf %104, %105 : vector<8x32xf32>
    %107 = arith.mulf %98, %80 : vector<8x32xf32>
    %108 = arith.mulf %92, %100 : vector<8x32xf32>
    %109 = arith.addf %107, %108 : vector<8x32xf32>
    %110 = math.tanh %109 : vector<8x32xf32>
    %111 = arith.mulf %106, %110 : vector<8x32xf32>
    %c0_74 = arith.constant 0 : index
    %c0_75 = arith.constant 0 : index
    %c0_76 = arith.constant 0 : index
    %112 = vector.load %arg13[%c0_74, %c0_75, %c0_76] : memref<2x8x32xf32, #tpu.memory_space<vmem>>, vector<1x8x32xf32>
    %113 = vector.shape_cast %112 : vector<1x8x32xf32> to vector<8x32xf32>
    %114 = vector.shape_cast %111 : vector<8x32xf32> to vector<1x8x32xf32>
    tpu.vector_store %arg13[%c0_74, %c0_75, %c0_76], %114 {strides = array<i32>} : memref<2x8x32xf32, #tpu.memory_space<vmem>>, vector<1x8x32xf32>,
    %c0_77 = arith.constant 0 : index
    %c0_78 = arith.constant 0 : index
    %c0_79 = arith.constant 0 : index
    %115 = vector.load %arg14[%c0_77, %c0_78, %c0_79] : memref<2x8x32xf32, #tpu.memory_space<vmem>>, vector<1x8x32xf32>
    %116 = vector.shape_cast %115 : vector<1x8x32xf32> to vector<8x32xf32>
    %117 = vector.shape_cast %109 : vector<8x32xf32> to vector<1x8x32xf32>
    tpu.vector_store %arg14[%c0_77, %c0_78, %c0_79], %117 {strides = array<i32>} : memref<2x8x32xf32, #tpu.memory_space<vmem>>, vector<1x8x32xf32>,
    %118 = arith.truncf %111 : vector<8x32xf32> to vector<8x32xbf16>
    %c0_80 = arith.constant 0 : index
    %c0_81 = arith.constant 0 : index
    %119 = vector.load %arg5[%c0_80, %c0_81] : memref<32x128xbf16, #tpu.memory_space<vmem>>, vector<32x128xbf16>
    %c0_82 = arith.constant 0 : index
    %c0_83 = arith.constant 0 : index
    %120 = vector.load %arg6[%c0_82, %c0_83] : memref<32x128xbf16, #tpu.memory_space<vmem>>, vector<32x128xbf16>
    %c0_84 = arith.constant 0 : index
    %c0_85 = arith.constant 0 : index
    %121 = vector.load %arg7[%c0_84, %c0_85] : memref<1x128xf32, #tpu.memory_space<vmem>>, vector<1x128xf32>
    %c1_86 = arith.constant 1 : index
    %c0_87 = arith.constant 0 : index
    %c0_88 = arith.constant 0 : index
    %122 = vector.load %arg10[%c1_86, %c0_87, %c0_88] : memref<2x8x32xf32, #tpu.memory_space<vmem>>, vector<1x8x32xf32>
    %123 = vector.shape_cast %122 : vector<1x8x32xf32> to vector<8x32xf32>
    %c1_89 = arith.constant 1 : index
    %c0_90 = arith.constant 0 : index
    %c0_91 = arith.constant 0 : index
    %124 = vector.load %arg11[%c1_89, %c0_90, %c0_91] : memref<2x8x32xf32, #tpu.memory_space<vmem>>, vector<1x8x32xf32>
    %125 = vector.shape_cast %124 : vector<1x8x32xf32> to vector<8x32xf32>
    %cst_92 = arith.constant dense<0.000000e+00> : vector<8x128xf32>
    %126 = tpu.matmul %118, %119, %cst_92 {dimension_numbers = #tpu.dot_dimension_numbers<[1], [0], [0], [1], [0, 0, 1, 1], [], []>} : vector<8x32xbf16>, vector<32x128xbf16>, vector<8x128xf32> -> vector<8x128xf32>
    %127 = arith.truncf %123 : vector<8x32xf32> to vector<8x32xbf16>
    %cst_93 = arith.constant dense<0.000000e+00> : vector<8x128xf32>
    %128 = tpu.matmul %127, %120, %cst_93 {dimension_numbers = #tpu.dot_dimension_numbers<[1], [0], [0], [1], [0, 0, 1, 1], [], []>} : vector<8x32xbf16>, vector<32x128xbf16>, vector<8x128xf32> -> vector<8x128xf32>
    %129 = arith.addf %126, %128 : vector<8x128xf32>
    %130 = vector.broadcast %121 : vector<1x128xf32> to vector<8x128xf32>
    %131 = arith.addf %129, %130 : vector<8x128xf32>
    %132 = vector.extract_strided_slice %131 {offsets = [0, 0], sizes = [8, 32], strides = [1, 1]} : vector<8x128xf32> to vector<8x32xf32>
    %133 = arith.negf %132 : vector<8x32xf32>
    %134 = math.exp %133 : vector<8x32xf32>
    %cst_94 = arith.constant 1.000000e+00 : f32
    %135 = vector.broadcast %cst_94 : f32 to vector<8x32xf32>
    %136 = arith.addf %135, %134 : vector<8x32xf32>
    %137 = arith.divf %135, %136 : vector<8x32xf32>
    %138 = vector.extract_strided_slice %131 {offsets = [0, 32], sizes = [8, 32], strides = [1, 1]} : vector<8x128xf32> to vector<8x32xf32>
    %139 = arith.negf %138 : vector<8x32xf32>
    %140 = math.exp %139 : vector<8x32xf32>
    %cst_95 = arith.constant 1.000000e+00 : f32
    %141 = vector.broadcast %cst_95 : f32 to vector<8x32xf32>
    %142 = arith.addf %141, %140 : vector<8x32xf32>
    %143 = arith.divf %141, %142 : vector<8x32xf32>
    %144 = vector.extract_strided_slice %131 {offsets = [0, 64], sizes = [8, 32], strides = [1, 1]} : vector<8x128xf32> to vector<8x32xf32>
    %145 = math.tanh %144 : vector<8x32xf32>
    %146 = vector.extract_strided_slice %131 {offsets = [0, 96], sizes = [8, 32], strides = [1, 1]} : vector<8x128xf32> to vector<8x32xf32>
    %147 = arith.negf %146 : vector<8x32xf32>
    %148 = math.exp %147 : vector<8x32xf32>
    %cst_96 = arith.constant 1.000000e+00 : f32
    %149 = vector.broadcast %cst_96 : f32 to vector<8x32xf32>
    %150 = arith.addf %149, %148 : vector<8x32xf32>
    %151 = arith.divf %149, %150 : vector<8x32xf32>
    %152 = arith.mulf %143, %125 : vector<8x32xf32>
    %153 = arith.mulf %137, %145 : vector<8x32xf32>
    %154 = arith.addf %152, %153 : vector<8x32xf32>
    %155 = math.tanh %154 : vector<8x32xf32>
    %156 = arith.mulf %151, %155 : vector<8x32xf32>
    %c1_97 = arith.constant 1 : index
    %c0_98 = arith.constant 0 : index
    %c0_99 = arith.constant 0 : index
    %157 = vector.load %arg13[%c1_97, %c0_98, %c0_99] : memref<2x8x32xf32, #tpu.memory_space<vmem>>, vector<1x8x32xf32>
    %158 = vector.shape_cast %157 : vector<1x8x32xf32> to vector<8x32xf32>
    %159 = vector.shape_cast %156 : vector<8x32xf32> to vector<1x8x32xf32>
    tpu.vector_store %arg13[%c1_97, %c0_98, %c0_99], %159 {strides = array<i32>} : memref<2x8x32xf32, #tpu.memory_space<vmem>>, vector<1x8x32xf32>,
    %c1_100 = arith.constant 1 : index
    %c0_101 = arith.constant 0 : index
    %c0_102 = arith.constant 0 : index
    %160 = vector.load %arg14[%c1_100, %c0_101, %c0_102] : memref<2x8x32xf32, #tpu.memory_space<vmem>>, vector<1x8x32xf32>
    %161 = vector.shape_cast %160 : vector<1x8x32xf32> to vector<8x32xf32>
    %162 = vector.shape_cast %154 : vector<8x32xf32> to vector<1x8x32xf32>
    tpu.vector_store %arg14[%c1_100, %c0_101, %c0_102], %162 {strides = array<i32>} : memref<2x8x32xf32, #tpu.memory_space<vmem>>, vector<1x8x32xf32>,
    %163 = arith.truncf %156 : vector<8x32xf32> to vector<8x32xbf16>
    %c0_103 = arith.constant 0 : index
    %c0_104 = arith.constant 0 : index
    %164 = vector.load %arg8[%c0_103, %c0_104] : memref<32x128xbf16, #tpu.memory_space<vmem>>, vector<32x128xbf16>
    %cst_105 = arith.constant dense<0.000000e+00> : vector<8x128xf32>
    %165 = tpu.matmul %163, %164, %cst_105 {dimension_numbers = #tpu.dot_dimension_numbers<[1], [0], [0], [1], [0, 0, 1, 1], [], []>} : vector<8x32xbf16>, vector<32x128xbf16>, vector<8x128xf32> -> vector<8x128xf32>
    %c0_106 = arith.constant 0 : index
    %c0_107 = arith.constant 0 : index
    %166 = vector.load %arg9[%c0_106, %c0_107] : memref<1x128xf32, #tpu.memory_space<vmem>>, vector<1x128xf32>
    %167 = vector.broadcast %166 : vector<1x128xf32> to vector<8x128xf32>
    %168 = arith.addf %165, %167 : vector<8x128xf32>
    %c0_108 = arith.constant 0 : index
    %c0_109 = arith.constant 0 : index
    %169 = vector.load %arg12[%c0_108, %c0_109] : memref<8x128xf32, #tpu.memory_space<vmem>>, vector<8x128xf32>
    tpu.vector_store %arg12[%c0_108, %c0_109], %168 {strides = array<i32>} : memref<8x128xf32, #tpu.memory_space<vmem>>, vector<8x128xf32>,
    return
  }
}

</mosaic_0001>

<bundles_post_ra>
// kernel: step.1
= control target key start
LH: loop header
LB: loop body
LE: loop exit
PB: predicated region body
PF: predicated region fallthrough
CT: control target
= control target key end

     0   :  { %20 = vsyncpa [#allocation7], 0  ;;  %s1722_s0 = inlined_call_operand.hbm [shape: s32[8], index: 0, kind: input, shape index: {}]   ;;  %s1723_s1 = inlined_call_operand.hbm [shape: f32[50,128], index: 1, kind: input, shape index: {}]   ;;  %s1724_s2 = inlined_call_operand.vmem [shape: bf16[128,128], index: 2, kind: input, shape index: {}]   ;;  %s1725_s3 = inlined_call_operand.hbm [shape: bf16[32,128], index: 3, kind: input, shape index: {}]   ;;  %s1726_s4 = inlined_call_operand.hbm [shape: f32[1,128], index: 4, kind: input, shape index: {}]   ;;  %s1727_s5 = inlined_call_operand.hbm [shape: bf16[32,128], index: 5, kind: input, shape index: {}]   ;;  %s1728_s6 = inlined_call_operand.hbm [shape: bf16[32,128], index: 6, kind: input, shape index: {}]   ;;  %s1729_s7 = inlined_call_operand.hbm [shape: f32[1,128], index: 7, kind: input, shape index: {}]   ;;  %s1730_s8 = inlined_call_operand.hbm [shape: bf16[32,128], index: 8, kind: input, shape index: {}]   ;;  %s1731_s9 = inlined_call_operand.vmem [shape: f32[1,128], index: 9, kind: input, shape index: {}]   ;;  %s1732_s10 = inlined_call_operand.vmem [shape: f32[2,8,32], index: 10, kind: input, shape index: {}, may-alias: {10,13}]   ;;  %s1733_s11 = inlined_call_operand.vmem [shape: f32[2,8,32], index: 11, kind: input, shape index: {}, may-alias: {11,14}]   ;;  %s1734_s12 = inlined_call_operand.hbm [shape: f32[8,128], index: 12, kind: output, shape index: {0}]   ;;  %s1735_s13 = inlined_call_operand.vmem [shape: f32[2,8,32], index: 13, kind: output, shape index: {1}, may-alias: {10,13}]   ;;  %s1736_s14 = inlined_call_operand.vmem [shape: f32[2,8,32], index: 14, kind: output, shape index: {2}, may-alias: {11,14}]  }
   0x1   :  { %21 = vsyncpa [#allocation5], 0 }
   0x2   :  { %22 = vsyncpa [#allocation10], 0 }
   0x3   :  { %23 = vsyncpa [#allocation13], 0 }
   0x4   :  { %24 = vsyncpa [#allocation16], 0 }
   0x5   :  { %25 = vsyncpa [#allocation6], 0  ;;  %s1366_s29 = smov [#allocation9]  }
   0x6   :  { %s54_s30 = sshll.u32 %s1366_s29, 4  ;;  %s55_s30 = int_to_ptr.vmem [resolvable:$true] %s54_s30 }
   0x7   :  { %s1022_s15 = scalar_lea.vmem %s55_s30, 16  ;;  %s1026_s16 = scalar_lea.vmem %s55_s30, 32 }
   0x8   :  { %p1023_p0 = scmp.ne.s32.totalorder %s55_s30, %s1022_s15  ;;  %p1027_p1 = scmp.lt.s32.totalorder %s55_s30, %s55_s30 }
   0x9   :  { %p1028_p2 = scmp.lt.s32.totalorder %s1026_s16, %s1022_s15 }
   0xb   :  { %p1029_p3 = por %p1028_p2, %p1027_p1 }
   0xd   :  { %p1030_p4 = pnand %p1029_p3, %p1023_p0 }
   0xf   :  { %1033 = shalt.err (!%p1030_p4)
}
  0x10   :  { %57 = dma.hbm_to_vmem [thread:$0]  %s1726_s4, 16, %s55_s30, [#allocation10]  }
  0x11   :  { %s1367_s19 = smov [#allocation12]  }
  0x12   :  { %s75_s20 = sshll.u32 %s1367_s19, 4  ;;  %s76_s20 = int_to_ptr.vmem [resolvable:$true] %s75_s20 }
  0x13   :  { %s1042_s21 = scalar_lea.vmem %s76_s20, 256  ;;  %p1047_p6 = scmp.lt.s32.totalorder %s76_s20, %s76_s20 }
  0x14   :  { %p1043_p5 = scmp.ne.s32.totalorder %s76_s20, %s1042_s21  ;;  %p1048_p7 = scmp.lt.s32.totalorder %s1042_s21, %s1042_s21 }
  0x16   :  { %p1049_p8 = por %p1048_p7, %p1047_p6 }
  0x18   :  { %p1050_p9 = pnand %p1049_p8, %p1043_p5 }
  0x1a   :  { %1053 = shalt.err (!%p1050_p9)
}
  0x1b   :  { %s1368_s22 = smov 64   ;;  %s1369_s23 = smov 4  }
  0x1c   :  { %81 = dma.hbm_to_vmem [thread:$0]  %s1728_s6, 256, %s76_s20, [#allocation13], %s1368_s22, %s1368_s22, %s1369_s23  }
  0x1d   :  { %s1370_s4 = smov [#allocation4]   ;;  %s1371_s28 = smov [#allocation8]  }
  0x1e   :  { %33 = dma.hbm_to_smem %s1722_s0, 16, %s1370_s4, [#allocation7]  }
  0x1f   :  { %s41_s29 = sshll.u32 %s1371_s28, 4  ;;  %s1372_s30 = smov [#allocation11]   ;;  %s42_s29 = int_to_ptr.vmem [resolvable:$true] %s41_s29 }
  0x20   :  { %s63_s15 = sshll.u32 %s1372_s30, 4  ;;  %s1070_s16 = scalar_lea.vmem %s42_s29, 256  ;;  %s64_s15 = int_to_ptr.vmem [resolvable:$true] %s63_s15 }
  0x21   :  { %p1071_p10 = scmp.ne.s32.totalorder %s42_s29, %s1070_s16  ;;  %p1075_p11 = scmp.lt.s32.totalorder %s42_s29, %s42_s29 }
  0x22   :  { %p1076_p12 = scmp.lt.s32.totalorder %s1070_s16, %s1070_s16 }
  0x24   :  { %p1077_p13 = por %p1076_p12, %p1075_p11 }
  0x26   :  { %p1078_p0 = pnand %p1077_p13, %p1071_p10 }
  0x28   :  { %1081 = shalt.err (!%p1078_p0)
}
  0x29   :  { %47 = dma.hbm_to_vmem [thread:$0]  %s1725_s3, 256, %s42_s29, [#allocation5], %s1368_s22, %s1368_s22, %s1369_s23  }
  0x2a   :  { %s1090_s0 = scalar_lea.vmem %s64_s15, 256  ;;  %p1095_p2 = scmp.lt.s32.totalorder %s64_s15, %s64_s15 }
  0x2b   :  { %p1091_p1 = scmp.ne.s32.totalorder %s64_s15, %s1090_s0  ;;  %p1096_p3 = scmp.lt.s32.totalorder %s1090_s0, %s1090_s0 }
  0x2d   :  { %p1097_p4 = por %p1096_p3, %p1095_p2 }
  0x2f   :  { %p1098_p5 = pnand %p1097_p4, %p1091_p1 }
  0x31   :  { %1101 = shalt.err (!%p1098_p5)
}
  0x32   :  { %69 = dma.hbm_to_vmem [thread:$0]  %s1727_s5, 256, %s64_s15, [#allocation10], %s1368_s22, %s1368_s22, %s1369_s23  }
  0x33   :  { %s1373_s20 = smov [#allocation14]   ;;  %s1374_s24 = smov [#allocation15]  }
  0x34   :  { %s88_s21 = sshll.u32 %s1373_s20, 4  ;;  %s97_s3 = sshll.u32 %s1374_s24, 4  ;;  %s89_s21 = int_to_ptr.vmem [resolvable:$true] %s88_s21  ;;  %s98_s3 = int_to_ptr.vmem [resolvable:$true] %s97_s3 }
  0x35   :  { %s1110_s25 = scalar_lea.vmem %s89_s21, 16  ;;  %s1114_s4 = scalar_lea.vmem %s89_s21, 32 }
  0x36   :  { %p1111_p6 = scmp.ne.s32.totalorder %s89_s21, %s1110_s25  ;;  %p1115_p7 = scmp.lt.s32.totalorder %s89_s21, %s89_s21 }
  0x37   :  { %p1116_p8 = scmp.lt.s32.totalorder %s1114_s4, %s1110_s25 }
  0x39   :  { %p1117_p9 = por %p1116_p8, %p1115_p7 }
  0x3b   :  { %p1118_p10 = pnand %p1117_p9, %p1111_p6 }
  0x3d   :  { %1121 = shalt.err (!%p1118_p10)
}
  0x3e   :  { %91 = dma.hbm_to_vmem [thread:$0]  %s1729_s7, 16, %s89_s21, [#allocation13]  }
  0x3f   :  { %s1130_s28 = scalar_lea.vmem %s98_s3, 256  ;;  %p1135_p12 = scmp.lt.s32.totalorder %s98_s3, %s98_s3 }
  0x40   :  { %p1131_p11 = scmp.ne.s32.totalorder %s98_s3, %s1130_s28  ;;  %p1136_p13 = scmp.lt.s32.totalorder %s1130_s28, %s1130_s28 }
  0x42   :  { %p1137_p0 = por %p1136_p13, %p1135_p12 }
  0x44   :  { %p1138_p1 = pnand %p1137_p0, %p1131_p11 }
  0x46   :  { %1141 = shalt.err (!%p1138_p1)
}
  0x47   :  { %103 = dma.hbm_to_vmem [thread:$0]  %s1730_s8, 256, %s98_s3, [#allocation16], %s1368_s22, %s1368_s22, %s1369_s23  }
  0x48   :  { %1338 = dma.done.wait [#allocation7], 16  }
  0x49   :  { %1339 = vsyncadd [#allocation7], 4294967280 }
  0x4a   :  { %1340 = dma.done.wait [#allocation5], 256  }
  0x4b   :  { %1341 = vsyncadd [#allocation5], 4294967040 }
  0x4c   :  { %1342 = dma.done.wait [#allocation10], 272  }
  0x4d   :  { %1343 = vsyncadd [#allocation10], 4294967024 }
  0x4e   :  { %1344 = dma.done.wait [#allocation13], 272  }
  0x4f   :  { %1345 = vsyncadd [#allocation13], 4294967024 }
  0x50   :  { %1346 = dma.done.wait [#allocation16], 256  }
  0x51   :  { %1347 = vsyncadd [#allocation16], 4294967040 }
  0x52   :  { %131 = sfence }
  0x53   :  { %s133_s7 = sld [smem:[#allocation4]]  ;;  %s1375_s30 = smov [#allocation2]  }
  0x54   :  { %s143_s15 = sshll.u32 %s1375_s30, 4  ;;  %s1496_s16 = sld [smem:[#allocation4 + $0x1]]  ;;  %s1498_s15 = int_to_ptr.vmem [resolvable:$true] %s143_s15 }
  0x55   :  { %s1376_s8 = smov [#allocation2 + $0x1]   ;;  %s1500_s6 = sld [smem:[#allocation4 + $0x2]] }
  0x56   :  { %s159_s23 = sshll.u32 %s1376_s8, 4  ;;  %s1377_s17 = smov [#allocation2 + $0x2]   ;;  %s1502_s23 = int_to_ptr.vmem [resolvable:$true] %s159_s23 }
  0x57   :  { %s175_s0 = sshll.u32 %s1377_s17, 4  ;;  %s1504_s18 = sld [smem:[#allocation4 + $0x3]]  ;;  %s1506_s0 = int_to_ptr.vmem [resolvable:$true] %s175_s0 }
  0x58   :  { %s1515_s27 = scalar_lea.hbm %s1723_s1, 896 }
  0x59   :  { %s835_s19 = sshll.u32 %s133_s7, 4 }
  0x5a   :  { %s135_s24 = scalar_lea.hbm %s1723_s1, %s835_s19  ;;  %s837_s3 = sshll.u32 %s1496_s16, 4 }
  0x5b   :  { %s1142_s25 = scalar_lea.hbm %s135_s24, 16  ;;  %p1145_p3 = scmp.lt.s32.totalorder %s135_s24, %s1723_s1 }
  0x5c   :  { %p1143_p2 = scmp.ne.s32.totalorder %s135_s24, %s1142_s25  ;;  %p1146_p4 = scmp.lt.s32.totalorder %s1515_s27, %s1142_s25 }
  0x5e   :  { %p1147_p5 = por %p1146_p4, %p1145_p3 }
  0x60   :  { %p1148_p6 = pnand %p1147_p5, %p1143_p2 }
  0x62   :  { %1151 = shalt.err (!%p1148_p6)  }
  0x63   :  { %s1152_s29 = scalar_lea.vmem %s1498_s15, 16  ;;  %s1524_s7 = scalar_lea.vmem %s1498_s15, 128 }
  0x64   :  { %p1153_p7 = scmp.ne.s32.totalorder %s1498_s15, %s1152_s29  ;;  %p1157_p8 = scmp.lt.s32.totalorder %s1498_s15, %s1498_s15 }
  0x65   :  { %p1158_p9 = scmp.lt.s32.totalorder %s1524_s7, %s1152_s29 }
  0x67   :  { %p1159_p10 = por %p1158_p9, %p1157_p8 }
  0x69   :  { %p1160_p11 = pnand %p1159_p10, %p1153_p7 }
  0x6b   :  { %1163 = shalt.err (!%p1160_p11)  }
  0x6c   :  { %146 = dma.hbm_to_vmem [thread:$0]  %s135_s24, 16, %s1498_s15, [#allocation3] }
  0x6d   :  { %s149_s8 = scalar_lea.hbm %s1723_s1, %s837_s3  ;;  %s839_s17 = sshll.u32 %s1500_s6, 4 }
  0x6e   :  { %s1164_s19 = scalar_lea.hbm %s149_s8, 16  ;;  %p1167_p13 = scmp.lt.s32.totalorder %s149_s8, %s1723_s1 }
  0x6f   :  { %p1165_p12 = scmp.ne.s32.totalorder %s149_s8, %s1164_s19  ;;  %p1168_p0 = scmp.lt.s32.totalorder %s1515_s27, %s1164_s19 }
  0x71   :  { %p1169_p1 = por %p1168_p0, %p1167_p13 }
  0x73   :  { %p1170_p2 = pnand %p1169_p1, %p1165_p12 }
  0x75   :  { %1173 = shalt.err (!%p1170_p2)  }
  0x76   :  { %s1174_s24 = scalar_lea.vmem %s1502_s23, 16  ;;  %p1179_p4 = scmp.lt.s32.totalorder %s1502_s23, %s1498_s15 }
  0x77   :  { %p1175_p3 = scmp.ne.s32.totalorder %s1502_s23, %s1174_s24  ;;  %p1180_p5 = scmp.lt.s32.totalorder %s1524_s7, %s1174_s24 }
  0x79   :  { %p1181_p6 = por %p1180_p5, %p1179_p4 }
  0x7b   :  { %p1182_p7 = pnand %p1181_p6, %p1175_p3 }
  0x7d   :  { %1185 = shalt.err (!%p1182_p7)  }
  0x7e   :  { %162 = dma.hbm_to_vmem [thread:$0]  %s149_s8, 16, %s1502_s23, [#allocation3 + $0x1] }
  0x7f   :  { %s165_s25 = scalar_lea.hbm %s1723_s1, %s839_s17  ;;  %s841_s4 = sshll.u32 %s1504_s18, 4 }
  0x80   :  { %s1186_s26 = scalar_lea.hbm %s165_s25, 16  ;;  %p1189_p9 = scmp.lt.s32.totalorder %s165_s25, %s1723_s1 }
  0x81   :  { %p1187_p8 = scmp.ne.s32.totalorder %s165_s25, %s1186_s26  ;;  %p1190_p10 = scmp.lt.s32.totalorder %s1515_s27, %s1186_s26 }
  0x83   :  { %p1191_p11 = por %p1190_p10, %p1189_p9 }
  0x85   :  { %p1192_p12 = pnand %p1191_p11, %p1187_p8 }
  0x87   :  { %1195 = shalt.err (!%p1192_p12)  }
  0x88   :  { %s1196_s23 = scalar_lea.vmem %s1506_s0, 16  ;;  %p1201_p0 = scmp.lt.s32.totalorder %s1506_s0, %s1498_s15 }
  0x89   :  { %p1197_p13 = scmp.ne.s32.totalorder %s1506_s0, %s1196_s23  ;;  %p1202_p1 = scmp.lt.s32.totalorder %s1524_s7, %s1196_s23 }
  0x8b   :  { %p1203_p2 = por %p1202_p1, %p1201_p0 }
  0x8d   :  { %p1204_p3 = pnand %p1203_p2, %p1197_p13 }
  0x8f   :  { %1207 = shalt.err (!%p1204_p3)  }
  0x90   :  { %178 = dma.hbm_to_vmem [thread:$0]  %s165_s25, 16, %s1506_s0, [#allocation3 + $0x2] }
  0x91   :  { %s181_s30 = scalar_lea.hbm %s1723_s1, %s841_s4  ;;  %s1378_s16 = smov [#allocation2 + $0x3]  }
  0x92   :  { %s191_s8 = sshll.u32 %s1378_s16, 4  ;;  %s842_s17 = sld [smem:[#allocation4 + $0x4]]  ;;  %s192_s8 = int_to_ptr.vmem [resolvable:$true] %s191_s8 }
  0x93   :  { %s1208_s19 = scalar_lea.hbm %s181_s30, 16  ;;  %p1211_p5 = scmp.lt.s32.totalorder %s181_s30, %s1723_s1 }
  0x94   :  { %p1209_p4 = scmp.ne.s32.totalorder %s181_s30, %s1208_s19  ;;  %p1212_p6 = scmp.lt.s32.totalorder %s1515_s27, %s1208_s19 }
  0x96   :  { %p1213_p7 = por %p1212_p6, %p1211_p5 }
  0x98   :  { %p1214_p8 = pnand %p1213_p7, %p1209_p4 }
  0x9a   :  { %1217 = shalt.err (!%p1214_p8)  }
  0x9b   :  { %s1218_s24 = scalar_lea.vmem %s192_s8, 16  ;;  %p1223_p10 = scmp.lt.s32.totalorder %s192_s8, %s1498_s15 }
  0x9c   :  { %p1219_p9 = scmp.ne.s32.totalorder %s192_s8, %s1218_s24  ;;  %p1224_p11 = scmp.lt.s32.totalorder %s1524_s7, %s1218_s24 }
  0x9e   :  { %p1225_p12 = por %p1224_p11, %p1223_p10 }
  0xa0   :  { %p1226_p13 = pnand %p1225_p12, %p1219_p9 }
  0xa2   :  { %1229 = shalt.err (!%p1226_p13)  }
  0xa3   :  { %194 = dma.hbm_to_vmem [thread:$0]  %s181_s30, 16, %s192_s8, [#allocation3 + $0x3] }
  0xa4   :  { %s1379_s0 = smov [#allocation2 + $0x4]   ;;  %s844_s3 = sld [smem:[#allocation4 + $0x5]] }
  0xa5   :  { %s207_s6 = sshll.u32 %s1379_s0, 4  ;;  %s1380_s25 = smov [#allocation2 + $0x5]   ;;  %s208_s6 = int_to_ptr.vmem [resolvable:$true] %s207_s6 }
  0xa6   :  { %s223_s4 = sshll.u32 %s1380_s25, 4  ;;  %s1567_s26 = sld [smem:[#allocation4 + $0x6]]  ;;  %s1569_s4 = int_to_ptr.vmem [resolvable:$true] %s223_s4 }
  0xa7   :  { %s843_s28 = sshll.u32 %s842_s17, 4 }
  0xa8   :  { %s197_s18 = scalar_lea.hbm %s1723_s1, %s843_s28 }
  0xa9   :  { %s1230_s29 = scalar_lea.hbm %s197_s18, 16  ;;  %p1233_p1 = scmp.lt.s32.totalorder %s197_s18, %s1723_s1 }
  0xaa   :  { %p1231_p0 = scmp.ne.s32.totalorder %s197_s18, %s1230_s29  ;;  %p1234_p2 = scmp.lt.s32.totalorder %s1515_s27, %s1230_s29 }
  0xac   :  { %p1235_p3 = por %p1234_p2, %p1233_p1 }
  0xae   :  { %p1236_p4 = pnand %p1235_p3, %p1231_p0 }
  0xb0   :  { %1239 = shalt.err (!%p1236_p4)  }
  0xb1   :  { %s1240_s8 = scalar_lea.vmem %s208_s6, 16  ;;  %p1245_p6 = scmp.lt.s32.totalorder %s208_s6, %s1498_s15 }
  0xb2   :  { %p1241_p5 = scmp.ne.s32.totalorder %s208_s6, %s1240_s8  ;;  %p1246_p7 = scmp.lt.s32.totalorder %s1524_s7, %s1240_s8 }
  0xb4   :  { %p1247_p8 = por %p1246_p7, %p1245_p6 }
  0xb6   :  { %p1248_p9 = pnand %p1247_p8, %p1241_p5 }
  0xb8   :  { %1251 = shalt.err (!%p1248_p9)  }
  0xb9   :  { %210 = dma.hbm_to_vmem [thread:$0]  %s197_s18, 16, %s208_s6, [#allocation3 + $0x4] }
  0xba   :  { %s845_s17 = sshll.u32 %s844_s3, 4  ;;  %s1381_s19 = smov [#allocation2 + $0x6]  }
  0xbb   :  { %s239_s20 = sshll.u32 %s1381_s19, 4  ;;  %s213_s0 = scalar_lea.hbm %s1723_s1, %s845_s17  ;;  %s1583_s20 = int_to_ptr.vmem [resolvable:$true] %s239_s20 }
  0xbc   :  { %s1252_s25 = scalar_lea.hbm %s213_s0, 16  ;;  %p1255_p11 = scmp.lt.s32.totalorder %s213_s0, %s1723_s1 }
  0xbd   :  { %p1253_p10 = scmp.ne.s32.totalorder %s213_s0, %s1252_s25  ;;  %p1256_p12 = scmp.lt.s32.totalorder %s1515_s27, %s1252_s25 }
  0xbf   :  { %p1257_p13 = por %p1256_p12, %p1255_p11 }
  0xc1   :  { %p1258_p0 = pnand %p1257_p13, %p1253_p10 }
  0xc3   :  { %1261 = shalt.err (!%p1258_p0)  }
  0xc4   :  { %s1262_s6 = scalar_lea.vmem %s1569_s4, 16  ;;  %p1267_p2 = scmp.lt.s32.totalorder %s1569_s4, %s1498_s15 }
  0xc5   :  { %p1263_p1 = scmp.ne.s32.totalorder %s1569_s4, %s1262_s6  ;;  %p1268_p3 = scmp.lt.s32.totalorder %s1524_s7, %s1262_s6 }
  0xc7   :  { %p1269_p4 = por %p1268_p3, %p1267_p2 }
  0xc9   :  { %p1270_p5 = pnand %p1269_p4, %p1263_p1 }
  0xcb   :  { %1273 = shalt.err (!%p1270_p5)  }
  0xcc   :  { %226 = dma.hbm_to_vmem [thread:$0]  %s213_s0, 16, %s1569_s4, [#allocation3 + $0x5] }
  0xcd   :  { %s847_s3 = sshll.u32 %s1567_s26, 4  ;;  %s848_s23 = sld [smem:[#allocation4 + $0x7]] }
  0xce   :  { %s229_s16 = scalar_lea.hbm %s1723_s1, %s847_s3 }
  0xcf   :  { %s1274_s30 = scalar_lea.hbm %s229_s16, 16  ;;  %p1277_p7 = scmp.lt.s32.totalorder %s229_s16, %s1723_s1 }
  0xd0   :  { %p1275_p6 = scmp.ne.s32.totalorder %s229_s16, %s1274_s30  ;;  %p1278_p8 = scmp.lt.s32.totalorder %s1515_s27, %s1274_s30 }
  0xd2   :  { %p1279_p9 = por %p1278_p8, %p1277_p7 }
  0xd4   :  { %p1280_p10 = pnand %p1279_p9, %p1275_p6 }
  0xd6   :  { %1283 = shalt.err (!%p1280_p10)  }
  0xd7   :  { %s1284_s4 = scalar_lea.vmem %s1583_s20, 16  ;;  %p1289_p12 = scmp.lt.s32.totalorder %s1583_s20, %s1498_s15 }
  0xd8   :  { %p1285_p11 = scmp.ne.s32.totalorder %s1583_s20, %s1284_s4  ;;  %p1290_p13 = scmp.lt.s32.totalorder %s1524_s7, %s1284_s4 }
  0xda   :  { %p1291_p0 = por %p1290_p13, %p1289_p12 }
  0xdc   :  { %p1292_p1 = pnand %p1291_p0, %p1285_p11 }
  0xde   :  { %1295 = shalt.err (!%p1292_p1)  }
  0xdf   :  { %242 = dma.hbm_to_vmem [thread:$0]  %s229_s16, 16, %s1583_s20, [#allocation3 + $0x6] }
  0xe0   :  { %s1382_s26 = smov [#allocation2 + $0x7]   ;;  %s849_s21 = sshll.u32 %s848_s23, 4 }
  0xe1   :  { %s255_s19 = sshll.u32 %s1382_s26, 4  ;;  %s245_s25 = scalar_lea.hbm %s1723_s1, %s849_s21  ;;  %s256_s19 = int_to_ptr.vmem [resolvable:$true] %s255_s19 }
  0xe2   :  { %s1296_s28 = scalar_lea.hbm %s245_s25, 16  ;;  %p1299_p3 = scmp.lt.s32.totalorder %s245_s25, %s1723_s1 }
  0xe3   :  { %p1297_p2 = scmp.ne.s32.totalorder %s245_s25, %s1296_s28  ;;  %p1300_p4 = scmp.lt.s32.totalorder %s1515_s27, %s1296_s28 }
  0xe5   :  { %p1301_p5 = por %p1300_p4, %p1299_p3 }
  0xe7   :  { %p1302_p6 = pnand %p1301_p5, %p1297_p2 }
  0xe9   :  { %1305 = shalt.err (!%p1302_p6)  }
  0xea   :  { %s1306_s3 = scalar_lea.vmem %s256_s19, 16  ;;  %p1311_p8 = scmp.lt.s32.totalorder %s256_s19, %s1498_s15 }
  0xeb   :  { %p1307_p7 = scmp.ne.s32.totalorder %s256_s19, %s1306_s3  ;;  %p1312_p9 = scmp.lt.s32.totalorder %s1524_s7, %s1306_s3 }
  0xed   :  { %p1313_p10 = por %p1312_p9, %p1311_p8 }
  0xef   :  { %p1314_p11 = pnand %p1313_p10, %p1307_p7 }
  0xf1   :  { %1317 = shalt.err (!%p1314_p11)  }
  0xf2   :  { %258 = dma.hbm_to_vmem [thread:$0]  %s245_s25, 16, %s256_s19, [#allocation3 + $0x7] }
  0xf3   :  { %1348 = dma.done.wait [#allocation3], 16 }
  0xf4   :  { %1349 = vsyncadd [#allocation3], 4294967280 }
  0xf5   :  { %1350 = dma.done.wait [#allocation3 + $0x1], 16 }
  0xf6   :  { %1351 = vsyncadd [#allocation3 + $0x1], 4294967280 }
  0xf7   :  { %1352 = dma.done.wait [#allocation3 + $0x2], 16 }
  0xf8   :  { %1353 = vsyncadd [#allocation3 + $0x2], 4294967280 }
  0xf9   :  { %1354 = dma.done.wait [#allocation3 + $0x3], 16 }
  0xfa   :  { %1355 = vsyncadd [#allocation3 + $0x3], 4294967280 }
  0xfb   :  { %1356 = dma.done.wait [#allocation3 + $0x4], 16 }
  0xfc   :  { %1357 = vsyncadd [#allocation3 + $0x4], 4294967280 }
  0xfd   :  { %1358 = dma.done.wait [#allocation3 + $0x5], 16 }
  0xfe   :  { %1359 = vsyncadd [#allocation3 + $0x5], 4294967280 }
  0xff   :  { %1360 = dma.done.wait [#allocation3 + $0x6], 16 }
 0x100   :  { %1361 = vsyncadd [#allocation3 + $0x6], 4294967280 }
 0x101   :  { %1362 = dma.done.wait [#allocation3 + $0x7], 16 }
 0x102   :  { %1363 = vsyncadd [#allocation3 + $0x7], 4294967280  ;;  %v1383_v0 = vmov 0.0   ;;  %vm1384_vm0 = vmmov 0   ;;  %v982_v1 = vld [vmem:[%s1724_s2 + $0x38] sm:$0xff]   ;;  %v983_v2 = vld [vmem:[%s1724_s2 + $0x30] sm:$0xff]  }
 0x103   :  { %916 = vmatprep.subr.bf16.mxu1 %v1383_v0  ;;  %908 = vmatprep.subr.bf16.mxu0 %v1383_v0  ;;  %v987_v3 = vld [vmem:[#allocation8 + $0x8] sm:$0xff]   ;;  %v984_v4 = vld [vmem:[%s1724_s2 + $0x28] sm:$0xff]   ;;  %v299_v6 = vld [vmem:[%s1732_s10] sm:$0xff]  ;;  %vm314_vm1 = vcmask 261120   ;;  %s1385_s28 = smov 32  }
 0x104   :  { %912 = vmatprep.mubr.msk.bf16.mxu0 %vm1384_vm0, %v1383_v0  ;;  %932 = vmatprep.mubr.msk.bf16.mxu1 %vm1384_vm0, %v1383_v0  ;;  %v989_v5 = vld [vmem:[#allocation8] sm:$0xff]   ;;  %v985_v7 = vld [vmem:[%s1724_s2 + $0x20] sm:$0xff]   ;;  %v301_v8 = vpack.c.bf16 %v299_v6, %v299_v6  ;;  %v986_v9 = vld [vmem:[%s1724_s2 + $0x18] sm:$0xff]  }
 0x105   :  { %917 = vmatpush3.bf16.msra.mxu1 %v982_v1  ;;  %909 = vmatpush3.bf16.msra.mxu0 %v987_v3  ;;  %v988_v10 = vld [vmem:[%s1724_s2 + $0x10] sm:$0xff]   ;;  %v990_v11 = vld [vmem:[%s1724_s2 + $0x8] sm:$0xff]   ;;  %v991_v12 = vld [vmem:[%s1724_s2] sm:$0xff]  }
 0x106   :  { %918 = vmatprep.subr.bf16.mxu1 %v1383_v0  ;;  %910 = vmatprep.subr.bf16.mxu0 %v1383_v0  ;;  %v276_v13 = vld [vmem:[#allocation2] sm:$0xff]  ;;  %v861_v19 = vld [vmem:[#allocation9] ss:$0 sm:$0xff]  ;;  %v993_v39 = vld [vmem:[#allocation12] sm:$0xff]  }
 0x107   :  { %v277_v14 = vpack.c.bf16 %v276_v13, %v276_v13  ;;  %v300_v27 = vld [vmem:[%s1733_s11] sm:$0xff]  ;;  %v992_v38 = vld [vmem:[#allocation12 + $0x8] sm:$0xff]   ;;  %v863_v40 = vld [vmem:[%s1732_s10 + $0x8] sm:$0xff] }
 0x108   :  { %v505_v41 = vpack.c.bf16 %v863_v40, %v863_v40  ;;  %v994_v42 = vld [vmem:[#allocation11 + $0x8] sm:$0xff]   ;;  %v995_v44 = vld [vmem:[#allocation11] sm:$0xff]  }
 0x109   :  { %919 = vmatpush3.bf16.msra.mxu1 %v983_v2  ;;  %911 = vmatpush3.bf16.msra.mxu0 %v989_v5  ;;  %v864_v48 = vld [vmem:[%s1733_s11 + $0x8] sm:$0xff]  ;;  %v871_v54 = vld [vmem:[#allocation14] ss:$0 sm:$0xff] }
 0x10a   :  { %920 = vmatprep.subr.bf16.mxu1 %v1383_v0  ;;  %936 = vmatprep.subr.bf16.mxu0 %v1383_v0 }
 0x10c   :  { %913 = vmatmul.mubr.msk.bf16.vlgmr.msra.gmra.mxu0 %vm314_vm1, %v301_v8 }
 0x10d   :  { %921 = vmatpush3.bf16.msra.mxu1 %v984_v4  ;;  %940 = vmatprep.mubr.msk.bf16.mxu0 %vm1384_vm0, %v1383_v0 }
 0x10e   :  { %922 = vmatprep.subr.bf16.mxu1 %v1383_v0  ;;  %937 = vmatpush3.bf16.msra.mxu0 %v992_v38 }
 0x10f   :  { %938 = vmatprep.subr.bf16.mxu0 %v1383_v0 }
 0x111   :  { %923 = vmatpush3.bf16.msra.mxu1 %v985_v7 }
 0x112   :  { %924 = vmatprep.subr.bf16.mxu1 %v1383_v0  ;;  %939 = vmatpush3.bf16.msra.mxu0 %v993_v39 }
 0x113   :  { %944 = vmatprep.subr.bf16.mxu0 %v1383_v0 }
 0x115   :  { %925 = vmatpush3.bf16.msra.mxu1 %v986_v9  ;;  %941 = vmatmul.mubr.msk.bf16.vlgmr.msra.gmra.mxu0 %vm314_vm1, %v505_v41 }
 0x116   :  { %926 = vmatprep.subr.bf16.mxu1 %v1383_v0  ;;  %945 = vmatpush3.bf16.msra.mxu0 %v994_v42 }
 0x117   :  { %948 = vmatprep.mubr.msk.bf16.mxu0 %vm1384_vm0, %v1383_v0  ;;  %946 = vmatprep.subr.bf16.mxu0 %v1383_v0 }
 0x119   :  { %927 = vmatpush3.bf16.msra.mxu1 %v988_v10  ;;  %v996_v10 = vld [vmem:[#allocation15 + $0x8] sm:$0xff]  }
 0x11a   :  { %928 = vmatprep.subr.bf16.mxu1 %v1383_v0  ;;  %947 = vmatpush3.bf16.msra.mxu0 %v995_v44 }
 0x11b   :  { %952 = vmatprep.subr.bf16.mxu0 %v1383_v0 }
 0x11d   :  { %929 = vmatpush3.bf16.msra.mxu1 %v990_v11  ;;  %v997_v11 = vld [vmem:[#allocation15] sm:$0xff]  }
 0x11e   :  { %930 = vmatprep.subr.bf16.mxu1 %v1383_v0 }
 0x121   :  { %931 = vmatpush3.bf16.msra.mxu1 %v991_v12 }
 0x124   :  { %933 = vmatmul.mubr.bf16.vlgmr.msra.gmra.mxu1 %v277_v14 }
 0x1cc   :  { %v352_v15 = vpop.f32.mrf.mxu0 }
 0x1ce   :  { %v914_v16 = vpop.f32.mrf.mxu0 }
 0x1d0   :  { %v355_v17 = vpop.f32.mrf.mxu0 }
 0x1d2   :  { %v915_v18 = vpop.f32.mrf.mxu0 }
 0x1d5   :  { %v555_v49 = vpop.f32.mrf.mxu0 }
 0x1d7   :  { %v942_v50 = vpop.f32.mrf.mxu0 }
 0x1d9   :  { %v558_v51 = vpop.f32.mrf.mxu0 }
 0x1db   :  { %v943_v52 = vpop.f32.mrf.mxu0 }
 0x1e4   :  { %v440_v20 = vpop.f32.mrf.mxu1 }
 0x1e5   :  { %v441_v21 = vadd.f32 %v440_v20, %v352_v15 }
 0x1e6   :  { %v934_v22 = vpop.f32.mrf.mxu1 }
 0x1e7   :  { %v452_v23 = vadd.f32 %v861_v19, %v441_v21  ;;  %v875_v19 = vld [vmem:[%s1731_s9] ss:$0 sm:$0xff] }
 0x1e8   :  { %v443_v24 = vpop.f32.mrf.mxu1 }
 0x1e9   :  { %998 = vtanh.f32 %v452_v23  ;;  %v862_v28 = vmul.f32 -1.442695, %v452_v23 }
 0x1ea   :  { %v935_v25 = vpop.f32.mrf.mxu1 }
 0x1eb   :  { %1000 = vpow2.f32 %v862_v28 }
 0x1f6   :  { %v999_v26 = vpop.eup %998 }
 0x1f7   :  { %466 = vrot.lane.b32.xlu0 %v999_v26, %s1368_s22 }
 0x1f8   :  { %v1001_v29 = vpop.eup %1000 }
 0x1f9   :  { %v456_v30 = vadd.f32 1.0, %v1001_v29 }
 0x1fb   :  { %461 = vrot.lane.b32.xlu0 %v300_v27, %s1385_s28  ;;  %1002 = vrcp.f32 %v456_v30 }
 0x208   :  { %v1003_v31 = vpop.eup %1002 }
 0x269   :  { %v467_v32 = vpop.permute.xlu0 %466 }
 0x26a   :  { %v469_v33 = vmul.f32 %v1003_v31, %v467_v32 }
 0x26c   :  { %471 = vrot.lane.b32.xlu1 %v469_v33, %s1385_s28 }
 0x26d   :  { %v462_v34 = vpop.permute.xlu0 %461 }
 0x26e   :  { %v464_v35 = vmul.f32 %v1003_v31, %v462_v34 }
 0x2de   :  { %v472_v36 = vpop.permute.xlu1 %471 }
 0x2df   :  { %v1669_v37 = vadd.f32 %v472_v36, %v464_v35 }
 0x2e1   :  { %1004 = vtanh.f32 %v1669_v37 }
 0x2ee   :  { %v1005_v43 = vpop.eup %1004 }
 0x2ef   :  { %477 = vrot.lane.b32.xlu1 %v1005_v43, %s1368_s22 }
 0x361   :  { %v478_v45 = vpop.permute.xlu1 %477 }
 0x362   :  { %v480_v46 = vmul.f32 %v1003_v31, %v478_v45 }
 0x364   :  { %v491_v47 = vpack.c.bf16 %v480_v46, %v480_v46 }
 0x366   :  { %562 = vrot.lane.b32.xlu0 %v491_v47, %s1385_s28 }
 0x36a   :  { %634 = vrot.lane.b32.xlu0 %v864_v48, %s1385_s28 }
 0x3d8   :  { %v563_v53 = vpop.permute.xlu0 %562 }
 0x3d9   :  { %949 = vmatmul.mubr.msk.bf16.vlgmr.msra.gmra.mxu0 %vm314_vm1, %v563_v53 }
 0x3da   :  { %956 = vmatprep.mubr.msk.bf16.mxu0 %vm1384_vm0, %v1383_v0  ;;  %953 = vmatpush3.bf16.msra.mxu0 %v996_v10 }
 0x3db   :  { %954 = vmatprep.subr.bf16.mxu0 %v1383_v0 }
 0x3dc   :  { %v635_v5 = vpop.permute.xlu0 %634 }
 0x3de   :  { %955 = vmatpush3.bf16.msra.mxu0 %v997_v11 }
 0x499   :  { %v613_v55 = vpop.f32.mrf.mxu0 }
 0x49a   :  { %v614_v56 = vadd.f32 %v613_v55, %v555_v49 }
 0x49b   :  { %v950_v57 = vpop.f32.mrf.mxu0 }
 0x49c   :  { %v625_v58 = vadd.f32 %v871_v54, %v614_v56 }
 0x49d   :  { %v616_v59 = vpop.f32.mrf.mxu0 }
 0x49e   :  { %1006 = vtanh.f32 %v625_v58  ;;  %v872_v62 = vmul.f32 -1.442695, %v625_v58 }
 0x49f   :  { %v951_v60 = vpop.f32.mrf.mxu0 }
 0x4a0   :  { %1008 = vpow2.f32 %v872_v62 }
 0x4ab   :  { %v1007_v61 = vpop.eup %1006 }
 0x4ac   :  { %639 = vrot.lane.b32.xlu1 %v1007_v61, %s1368_s22 }
 0x4ad   :  { %v1009_v63 = vpop.eup %1008 }
 0x4ae   :  { %v629_v1 = vadd.f32 1.0, %v1009_v63 }
 0x4b0   :  { %1010 = vrcp.f32 %v629_v1 }
 0x4bd   :  { %v1011_v2 = vpop.eup %1010 }
 0x4be   :  { %v637_v6 = vmul.f32 %v1011_v2, %v635_v5 }
 0x51e   :  { %v640_v3 = vpop.permute.xlu1 %639 }
 0x51f   :  { %v642_v4 = vmul.f32 %v1011_v2, %v640_v3 }
 0x521   :  { %644 = vrot.lane.b32.xlu1 %v642_v4, %s1385_s28 }
 0x593   :  { %v645_v7 = vpop.permute.xlu1 %644 }
 0x594   :  { %v647_v8 = vadd.f32 %v645_v7, %v637_v6 }
 0x596   :  { %1012 = vtanh.f32 %v647_v8 }
 0x5a3   :  { %v1013_v9 = vpop.eup %1012 }
 0x5a4   :  { %650 = vrot.lane.b32.xlu0 %v1013_v9, %s1368_s22  ;;  %s1386_s22 = smov 96  }
 0x5a8   :  { %482 = vrot.lane.b32.xlu0 %v480_v46, %s1385_s28 }
 0x616   :  { %v651_v12 = vpop.permute.xlu0 %650 }
 0x617   :  { %v653_v13 = vmul.f32 %v1011_v2, %v651_v12 }
 0x619   :  { %v666_v14 = vpack.c.bf16 %v653_v13, %v653_v13  ;;  %655 = vrot.lane.b32.xlu0 %v653_v13, %s1385_s28 }
 0x61a   :  { %v483_v15 = vpop.permute.xlu0 %482 }
 0x61b   :  { %485 = vst.msk [vmem:[%s1735_s13] sm:$0xff] %vm314_vm1, %v483_v15  ;;  %679 = vrot.lane.b32.xlu1 %v666_v14, %s1385_s28 }
 0x61f   :  { %487 = vrot.lane.b32.xlu1 %v1669_v37, %s1386_s22 }
 0x623   :  { %661 = vrot.lane.b32.xlu1 %v647_v8, %s1386_s22 }
 0x68b   :  { %v656_v0 = vpop.permute.xlu0 %655 }
 0x68c   :  { %873 = vst.msk [vmem:[%s1735_s13 + $0x8] sm:$0xff] %vm314_vm1, %v656_v0  ;;  %s1387_s13 = smov [#allocation17]  }
 0x68d   :  { %v680_v16 = vpop.permute.xlu1 %679  ;;  %s743_s30 = sshll.u32 %s1387_s13, 4  ;;  %s744_s30 = int_to_ptr.vmem [resolvable:$true] %s743_s30 }
 0x68e   :  { %957 = vmatmul.mubr.msk.bf16.vlgmr.msra.gmra.mxu0 %vm314_vm1, %v680_v16  ;;  %s1318_s8 = scalar_lea.vmem %s744_s30, 128  ;;  %p1323_p13 = scmp.lt.s32.totalorder %s744_s30, %s744_s30 }
 0x68f   :  { %p1319_p12 = scmp.ne.s32.totalorder %s744_s30, %s1318_s8  ;;  %p1324_p0 = scmp.lt.s32.totalorder %s1318_s8, %s1318_s8 }
 0x691   :  { %v488_v17 = vpop.permute.xlu1 %487  ;;  %p1325_p1 = por %p1324_p0, %p1323_p13 }
 0x692   :  { %490 = vst.msk [vmem:[%s1736_s14] sm:$0xff] %vm314_vm1, %v488_v17 }
 0x693   :  { %p1326_p2 = pnand %p1325_p1, %p1319_p12 }
 0x695   :  { %v662_v18 = vpop.permute.xlu1 %661 }
 0x696   :  { %874 = vst.msk [vmem:[%s1736_s14 + $0x8] sm:$0xff] %vm314_vm1, %v662_v18 }
 0x74e   :  { %v730_v20 = vpop.f32.mrf.mxu0 }
 0x74f   :  { %v731_v21 = vadd.f32 %v875_v19, %v730_v20 }
 0x750   :  { %v958_v22 = vpop.f32.mrf.mxu0 }
 0x751   :  { %736 = vst [vmem:[#allocation17] sm:$0xff] %v731_v21 }
 0x752   :  { %v733_v23 = vpop.f32.mrf.mxu0 }
 0x753   :  { %1329 = shalt.err (!%p1326_p2)
}
 0x754   :  { %746 = dma.vmem_to_hbm [thread:$0]  %s744_s30, 128, %s1734_s12, [#allocation6]   ;;  %v959_v24 = vpop.f32.mrf.mxu0 }
 0x755   :  { %1364 = dma.done.wait [#allocation6], 128  }
 0x756   :  { %1365 = vsyncadd [#allocation6], 4294967168 }
 0x757   :  { %758 = vsyncpa [#allocation5], 1 }
 0x758   :  { %759 = vsyncpa [#allocation10], 1 }
 0x759   :  { %760 = vsyncpa [#allocation13], 1 }
 0x75a   :  { %761 = vsyncpa [#allocation16], 1 }
 0x75b   :  { %762 = vsyncpa [#allocation6], 1 }
 0x75c   :  { %763 = vsyncpa [#allocation7], 1 }
 0x75d   :  { %764 = vsyncmov [#allocation3] }
 0x760   :  { %s765_s9 = vpop.sfrf %764 }
 0x761   :  { %p879_p3 = scmp.ne.s32.totalorder %s765_s9, 0 }
 0x763   :  { %769 = shalt.err (%p879_p3)  }
 0x764   :  { %771 = vsyncmov [#allocation3 + $0x1] }
 0x767   :  { %s772_s4 = vpop.sfrf %771 }
 0x768   :  { %p880_p4 = scmp.ne.s32.totalorder %s772_s4, 0 }
 0x76a   :  { %776 = shalt.err (%p880_p4)  }
 0x76b   :  { %778 = vsyncmov [#allocation3 + $0x2] }
 0x76e   :  { %s779_s26 = vpop.sfrf %778 }
 0x76f   :  { %p881_p5 = scmp.ne.s32.totalorder %s779_s26, 0 }
 0x771   :  { %783 = shalt.err (%p881_p5)  }
 0x772   :  { %785 = vsyncmov [#allocation3 + $0x3] }
 0x775   :  { %s786_s12 = vpop.sfrf %785 }
 0x776   :  { %p882_p6 = scmp.ne.s32.totalorder %s786_s12, 0 }
 0x778   :  { %790 = shalt.err (%p882_p6)  }
 0x779   :  { %792 = vsyncmov [#allocation3 + $0x4] }
 0x77c   :  { %s793_s19 = vpop.sfrf %792 }
 0x77d   :  { %p883_p7 = scmp.ne.s32.totalorder %s793_s19, 0 }
 0x77f   :  { %797 = shalt.err (%p883_p7)  }
 0x780   :  { %799 = vsyncmov [#allocation3 + $0x5] }
 0x783   :  { %s800_s21 = vpop.sfrf %799 }
 0x784   :  { %p884_p8 = scmp.ne.s32.totalorder %s800_s21, 0 }
 0x786   :  { %804 = shalt.err (%p884_p8)  }
 0x787   :  { %806 = vsyncmov [#allocation3 + $0x6] }
 0x78a   :  { %s807_s24 = vpop.sfrf %806 }
 0x78b   :  { %p885_p9 = scmp.ne.s32.totalorder %s807_s24, 0 }
 0x78d   :  { %811 = shalt.err (%p885_p9)  }
 0x78e   :  { %813 = vsyncmov [#allocation3 + $0x7] }
 0x791   :  { %s814_s0 = vpop.sfrf %813 }
 0x792   :  { %p886_p10 = scmp.ne.s32.totalorder %s814_s0, 0 }
 0x794   :  { %818 = shalt.err (%p886_p10)  }

</bundles_post_ra>
